<compile_context>
chip_gen: v5e
topology: v5e:2x2
jax: 0.10.0
libtpu: 0.0.40
codegen_flags: <defaults>
</compile_context>

<pallas_src>
import functools

import jax
import jax.numpy as jnp
import numpy as np
from jax.experimental import pallas as pl
from jax.experimental.pallas import tpu as pltpu


def _round_up(x, m):
    return (x + m - 1) // m * m


# ----------------------------------------------------------------------------
# Pallas kernel: fused 3x3 conv (pad=1, stride=1) + bias + channel mask + ReLU
# for a batch tile, with in-kernel im2col via lane rolls and a single MXU dot.
# ----------------------------------------------------------------------------
def _conv3x3_select_relu_kernel(x_ref, w_ref, b_ref, m_ref, o_ref, taps_ref,
                                *, W, c_in_pad):
    # x_ref   : (c_in_pad, B*H*W)       batch tile, spatial+batch in the lane dim
    # w_ref   : (c_out, 9*c_in_pad)     stacked per-tap weights (channel mask folded)
    # b_ref   : (c_out, 1)              conv bias (channel mask folded)
    # m_ref   : (9, B*H*W)              precomputed pad-halo validity masks
    # o_ref   : (c_out, B*H*W)          lane-dense output
    # taps_ref: (9*c_in_pad, B*H*W)     VMEM scratch holding the stacked im2col RHS
    bhw = x_ref.shape[1]
    x = x_ref[...]                                            # (c_in_pad, BHW)

    # In-kernel im2col: 9 taps, each = lane roll + one vmul with the pad mask.
    for di in range(3):
        for dj in range(3):
            tap = 3 * di + dj
            s = (di - 1) * W + (dj - 1)                       # flat lane shift
            if s == 0:
                xt = x                                        # center tap: always valid
            else:
                xs = pltpu.roll(x, shift=(-s) % bhw, axis=1)
                # Masks are per-image (mod H*W), so cross-image / block wrap
                # contributions from the roll are zeroed here.
                xt = xs * m_ref[pl.ds(tap, 1), :]
            taps_ref[pl.ds(tap * c_in_pad, c_in_pad), :] = xt  # aligned sublane store

    # One MXU contraction over K = 9*c_in_pad instead of 9 small dots + VPU adds.
    y = jnp.dot(w_ref[...], taps_ref[...], preferred_element_type=jnp.float32)
    y = y + b_ref[...]                                        # bias (+ folded mask)
    o_ref[...] = jnp.maximum(y, 0.0).astype(o_ref.dtype)      # ReLU block


# ----------------------------------------------------------------------------
# Host-side helpers
# ----------------------------------------------------------------------------
def _make_pad_masks(h, w, b_tile):
    """(9, b_tile*h*w) f32 validity masks for the 3x3 pad=1 halo (per image)."""
    hh = np.arange(h * w) // w
    ww = np.arange(h * w) % w
    masks = np.zeros((9, h * w), np.float32)
    for di in range(3):
        for dj in range(3):
            hs = hh + (di - 1)
            ws = ww + (dj - 1)
            valid = (hs >= 0) & (hs < h) & (ws >= 0) & (ws < w)
            masks[3 * di + dj] = valid.astype(np.float32)
    return np.tile(masks, (1, b_tile))


def _choose_batch_tile(n, c_in_pad, c_out, hw, vmem_budget_bytes=8 << 20):
    """Images per grid step: amortize per-step overhead, stay in VMEM budget,
    keep >= 2 grid steps when possible (v7x has 2 TensorCores), and keep the
    lane extent 128-aligned unless the block covers the whole batch."""
    # f32 bytes per image per step: double-buffered x & out, tap scratch, masks.
    per_image = 4 * hw * (2 * c_in_pad + 2 * c_out + 9 * c_in_pad + 2 * 9)
    cap = max(1, vmem_budget_bytes // per_image)
    if n >= 2:
        cap = min(cap, max(1, n // 2))       # keep at least 2 grid steps
    cap = min(cap, n)
    candidates = [t for t in range(1, n + 1)
                  if n % t == 0 and ((t * hw) % 128 == 0 or t == n)]
    under = [t for t in candidates if t <= cap]
    return max(under) if under else min(candidates)


# ----------------------------------------------------------------------------
# Wrapper reproducing NasBaseHybridSequential.forward(x, block_channel_mask)
# ----------------------------------------------------------------------------
def nas_base_hybrid_sequential_forward(x_nchw, block_channel_mask, params):
    """x_nchw: (N, C_in, H, W) float32; block_channel_mask: (1, M) float32."""
    weight = params["conv_weight"]   # (C_out, C_in, 3, 3)  -- torch OIHW layout
    bias = params["conv_bias"]       # (C_out,)
    c_out, c_in, kh, kw = weight.shape
    assert (kh, kw) == (3, 3)
    n, _, h, w = x_nchw.shape
    hw = h * w
    c_in_pad = _round_up(c_in, 8)    # aligned sublane offsets for the tap scratch

    # ChannelSelector: narrow(1, 0, channel_number) then broadcast multiply.
    # Fold the mask into weight & bias:  relu(m*(Wx+b)) == relu((mW)x + mb).
    # (Assumes channel_number == C_out, matching the instantiated cell.)
    ch_mask = block_channel_mask[0, :c_out].astype(jnp.float32)           # (C_out,)
    w_eff = weight.astype(jnp.float32) * ch_mask[:, None, None, None]     # (C_out,C_in,3,3)
    b_eff = (bias.astype(jnp.float32) * ch_mask).reshape(c_out, 1)        # (C_out, 1)

    # Stacked 2D weights: K index = (3*di + dj)*c_in_pad + c  -> (C_out, 9*C_in_pad)
    w_t = jnp.transpose(w_eff, (0, 2, 3, 1))                              # (C_out,3,3,C_in)
    w_t = jnp.pad(w_t, ((0, 0), (0, 0), (0, 0), (0, c_in_pad - c_in)))
    w2d = w_t.reshape(c_out, kh * kw * c_in_pad)

    # Batch merged into the lane axis: (C_in_pad, N*H*W), channel-padded with zeros.
    x_t = jnp.transpose(x_nchw.astype(jnp.float32), (1, 0, 2, 3)).reshape(c_in, n * hw)
    x_flat = jnp.pad(x_t, ((0, c_in_pad - c_in), (0, 0)))

    b_tile = _choose_batch_tile(n, c_in_pad, c_out, hw)
    bhw = b_tile * hw
    grid = (n // b_tile,)

    mask_taps = jnp.asarray(_make_pad_masks(h, w, b_tile))                # (9, bhw)

    kernel = functools.partial(_conv3x3_select_relu_kernel, W=w, c_in_pad=c_in_pad)
    out_flat = pl.pallas_call(
        kernel,
        out_shape=jax.ShapeDtypeStruct((c_out, n * hw), jnp.float32),
        grid_spec=pltpu.PrefetchScalarGridSpec(
            num_scalar_prefetch=0,
            grid=grid,                                                    # batch tiles
            in_specs=[
                pl.BlockSpec((c_in_pad, bhw), lambda i: (0, i)),          # x tile
                pl.BlockSpec((c_out, kh * kw * c_in_pad), lambda i: (0, 0)),  # weights
                pl.BlockSpec((c_out, 1), lambda i: (0, 0)),               # bias
                pl.BlockSpec((kh * kw, bhw), lambda i: (0, 0)),           # pad masks
            ],
            out_specs=pl.BlockSpec((c_out, bhw), lambda i: (0, i)),
            scratch_shapes=[pltpu.VMEM((kh * kw * c_in_pad, bhw), jnp.float32)],
        ),
        compiler_params=pltpu.CompilerParams(
            dimension_semantics=("parallel",),   # batch tiles shard across TCs (v7x)
        ),
    )(x_flat, w2d, b_eff, mask_taps)

    # (C_out, N*H*W) -> NCHW
    return jnp.transpose(out_flat.reshape(c_out, n, h, w), (1, 0, 2, 3))


# ----------------------------------------------------------------------------
# Pure-JAX reference (mirrors the PyTorch forward) for correctness checking.
# ----------------------------------------------------------------------------
def _reference_forward(x_nchw, block_channel_mask, params):
    weight = params["conv_weight"]
    bias = params["conv_bias"]
    c_out = weight.shape[0]
    y = jax.lax.conv_general_dilated(
        x_nchw, weight, window_strides=(1, 1), padding=((1, 1), (1, 1)),
        dimension_numbers=("NCHW", "OIHW", "NCHW"))
    y = y + bias.reshape(1, -1, 1, 1)
    mask = block_channel_mask[:, :c_out].reshape(1, c_out, 1, 1)
    y = y * mask
    return jnp.maximum(y, 0.0)


if __name__ == "__main__":
    key = jax.random.PRNGKey(0)
    k_x, k_w, k_b = jax.random.split(key, 3)

    N, C_IN, H, W = 2, 4, 16, 16
    C_OUT, KH, KW = 8, 3, 3
    MASK_LEN = 16  # block_channel_mask is wider than channel_number; narrowed inside

    x = jax.random.normal(k_x, (N, C_IN, H, W), dtype=jnp.float32)
    params = {
        "conv_weight": 0.1 * jax.random.normal(k_w, (C_OUT, C_IN, KH, KW), jnp.float32),
        "conv_bias": 0.05 * jax.random.normal(k_b, (C_OUT,), jnp.float32),
    }
    # Deterministic 0/1 channel mask (first C_OUT entries are used).
    mask_vals = jnp.array([[1, 0, 1, 1, 0, 1, 1, 1, 0, 0, 1, 1, 0, 1, 0, 1]],
                          dtype=jnp.float32)
    assert mask_vals.shape == (1, MASK_LEN)

    out = nas_base_hybrid_sequential_forward(x, mask_vals, params)
    out = jax.block_until_ready(out)

    ref = _reference_forward(x, mask_vals, params)
    np.testing.assert_allclose(np.asarray(out), np.asarray(ref), rtol=1e-5, atol=1e-5)
    assert out.shape == (N, C_OUT, H, W)

    print("KERNEL_OK")
</pallas_src>

<mosaic_0001>
module attributes {stable_mosaic.version = 11 : i64} {
  func.func @_conv3x3_select_relu_kernel(%arg0: i32, %arg1: memref<8x256xf32, #tpu.memory_space<vmem>>, %arg2: memref<8x72xf32, #tpu.memory_space<vmem>>, %arg3: memref<8x1xf32, #tpu.memory_space<vmem>>, %arg4: memref<9x256xf32, #tpu.memory_space<vmem>>, %arg5: memref<8x256xf32, #tpu.memory_space<vmem>>, %arg6: memref<72x256xf32, #tpu.memory_space<vmem>>) attributes {dimension_semantics = [#tpu.dimension_semantics<parallel>], iteration_bounds = array<i64: 2>, scalar_prefetch = 0 : i64, scratch_operands = 1 : i64, tpu.core_type = #tpu.core_type<tc>, window_params = [{transform_indices = @transform_0, window_bounds = array<i64: 8, 256>}, {pipeline_mode = #tpu.pipeline_mode<synchronous>, transform_indices = @transform_1, window_bounds = array<i64: 8, 72>}, {pipeline_mode = #tpu.pipeline_mode<synchronous>, transform_indices = @transform_2, window_bounds = array<i64: 8, 1>}, {pipeline_mode = #tpu.pipeline_mode<synchronous>, transform_indices = @transform_3, window_bounds = array<i64: 9, 256>}, {transform_indices = @transform_4, window_bounds = array<i64: 8, 256>}]} {
    %c0 = arith.constant 0 : index
    %c0_0 = arith.constant 0 : index
    %0 = vector.load %arg1[%c0, %c0_0] : memref<8x256xf32, #tpu.memory_space<vmem>>, vector<8x256xf32>
    %c17_i32 = arith.constant 17 : i32
    %1 = tpu.dynamic_rotate %0 by %c17_i32 dim 1 : vector<8x256xf32>, i32 -> vector<8x256xf32>
    %c0_1 = arith.constant 0 : index
    %c0_2 = arith.constant 0 : index
    %2 = vector.load %arg4[%c0_1, %c0_2] : memref<9x256xf32, #tpu.memory_space<vmem>>, vector<1x256xf32>
    %3 = vector.broadcast %2 : vector<1x256xf32> to vector<8x256xf32>
    %4 = arith.mulf %1, %3 : vector<8x256xf32>
    %c0_3 = arith.constant 0 : index
    %c0_4 = arith.constant 0 : index
    %5 = vector.load %arg6[%c0_3, %c0_4] : memref<72x256xf32, #tpu.memory_space<vmem>>, vector<8x256xf32>
    tpu.vector_store %arg6[%c0_3, %c0_4], %4 {strides = array<i32>} : memref<72x256xf32, #tpu.memory_space<vmem>>, vector<8x256xf32>,
    %c16_i32 = arith.constant 16 : i32
    %6 = tpu.dynamic_rotate %0 by %c16_i32 dim 1 : vector<8x256xf32>, i32 -> vector<8x256xf32>
    %c1 = arith.constant 1 : index
    %c0_5 = arith.constant 0 : index
    %7 = vector.load %arg4[%c1, %c0_5] : memref<9x256xf32, #tpu.memory_space<vmem>>, vector<1x256xf32>
    %8 = vector.broadcast %7 : vector<1x256xf32> to vector<8x256xf32>
    %9 = arith.mulf %6, %8 : vector<8x256xf32>
    %c8 = arith.constant 8 : index
    %c0_6 = arith.constant 0 : index
    %10 = vector.load %arg6[%c8, %c0_6] : memref<72x256xf32, #tpu.memory_space<vmem>>, vector<8x256xf32>
    tpu.vector_store %arg6[%c8, %c0_6], %9 {strides = array<i32>} : memref<72x256xf32, #tpu.memory_space<vmem>>, vector<8x256xf32>,
    %c15_i32 = arith.constant 15 : i32
    %11 = tpu.dynamic_rotate %0 by %c15_i32 dim 1 : vector<8x256xf32>, i32 -> vector<8x256xf32>
    %c2 = arith.constant 2 : index
    %c0_7 = arith.constant 0 : index
    %12 = vector.load %arg4[%c2, %c0_7] : memref<9x256xf32, #tpu.memory_space<vmem>>, vector<1x256xf32>
    %13 = vector.broadcast %12 : vector<1x256xf32> to vector<8x256xf32>
    %14 = arith.mulf %11, %13 : vector<8x256xf32>
    %c16 = arith.constant 16 : index
    %c0_8 = arith.constant 0 : index
    %15 = vector.load %arg6[%c16, %c0_8] : memref<72x256xf32, #tpu.memory_space<vmem>>, vector<8x256xf32>
    tpu.vector_store %arg6[%c16, %c0_8], %14 {strides = array<i32>} : memref<72x256xf32, #tpu.memory_space<vmem>>, vector<8x256xf32>,
    %c1_i32 = arith.constant 1 : i32
    %16 = tpu.dynamic_rotate %0 by %c1_i32 dim 1 : vector<8x256xf32>, i32 -> vector<8x256xf32>
    %c3 = arith.constant 3 : index
    %c0_9 = arith.constant 0 : index
    %17 = vector.load %arg4[%c3, %c0_9] : memref<9x256xf32, #tpu.memory_space<vmem>>, vector<1x256xf32>
    %18 = vector.broadcast %17 : vector<1x256xf32> to vector<8x256xf32>
    %19 = arith.mulf %16, %18 : vector<8x256xf32>
    %c24 = arith.constant 24 : index
    %c0_10 = arith.constant 0 : index
    %20 = vector.load %arg6[%c24, %c0_10] : memref<72x256xf32, #tpu.memory_space<vmem>>, vector<8x256xf32>
    tpu.vector_store %arg6[%c24, %c0_10], %19 {strides = array<i32>} : memref<72x256xf32, #tpu.memory_space<vmem>>, vector<8x256xf32>,
    %c32 = arith.constant 32 : index
    %c0_11 = arith.constant 0 : index
    %21 = vector.load %arg6[%c32, %c0_11] : memref<72x256xf32, #tpu.memory_space<vmem>>, vector<8x256xf32>
    tpu.vector_store %arg6[%c32, %c0_11], %0 {strides = array<i32>} : memref<72x256xf32, #tpu.memory_space<vmem>>, vector<8x256xf32>,
    %c255_i32 = arith.constant 255 : i32
    %22 = tpu.dynamic_rotate %0 by %c255_i32 dim 1 : vector<8x256xf32>, i32 -> vector<8x256xf32>
    %c5 = arith.constant 5 : index
    %c0_12 = arith.constant 0 : index
    %23 = vector.load %arg4[%c5, %c0_12] : memref<9x256xf32, #tpu.memory_space<vmem>>, vector<1x256xf32>
    %24 = vector.broadcast %23 : vector<1x256xf32> to vector<8x256xf32>
    %25 = arith.mulf %22, %24 : vector<8x256xf32>
    %c40 = arith.constant 40 : index
    %c0_13 = arith.constant 0 : index
    %26 = vector.load %arg6[%c40, %c0_13] : memref<72x256xf32, #tpu.memory_space<vmem>>, vector<8x256xf32>
    tpu.vector_store %arg6[%c40, %c0_13], %25 {strides = array<i32>} : memref<72x256xf32, #tpu.memory_space<vmem>>, vector<8x256xf32>,
    %c241_i32 = arith.constant 241 : i32
    %27 = tpu.dynamic_rotate %0 by %c241_i32 dim 1 : vector<8x256xf32>, i32 -> vector<8x256xf32>
    %c6 = arith.constant 6 : index
    %c0_14 = arith.constant 0 : index
    %28 = vector.load %arg4[%c6, %c0_14] : memref<9x256xf32, #tpu.memory_space<vmem>>, vector<1x256xf32>
    %29 = vector.broadcast %28 : vector<1x256xf32> to vector<8x256xf32>
    %30 = arith.mulf %27, %29 : vector<8x256xf32>
    %c48 = arith.constant 48 : index
    %c0_15 = arith.constant 0 : index
    %31 = vector.load %arg6[%c48, %c0_15] : memref<72x256xf32, #tpu.memory_space<vmem>>, vector<8x256xf32>
    tpu.vector_store %arg6[%c48, %c0_15], %30 {strides = array<i32>} : memref<72x256xf32, #tpu.memory_space<vmem>>, vector<8x256xf32>,
    %c240_i32 = arith.constant 240 : i32
    %32 = tpu.dynamic_rotate %0 by %c240_i32 dim 1 : vector<8x256xf32>, i32 -> vector<8x256xf32>
    %c7 = arith.constant 7 : index
    %c0_16 = arith.constant 0 : index
    %33 = vector.load %arg4[%c7, %c0_16] : memref<9x256xf32, #tpu.memory_space<vmem>>, vector<1x256xf32>
    %34 = vector.broadcast %33 : vector<1x256xf32> to vector<8x256xf32>
    %35 = arith.mulf %32, %34 : vector<8x256xf32>
    %c56 = arith.constant 56 : index
    %c0_17 = arith.constant 0 : index
    %36 = vector.load %arg6[%c56, %c0_17] : memref<72x256xf32, #tpu.memory_space<vmem>>, vector<8x256xf32>
    tpu.vector_store %arg6[%c56, %c0_17], %35 {strides = array<i32>} : memref<72x256xf32, #tpu.memory_space<vmem>>, vector<8x256xf32>,
    %c239_i32 = arith.constant 239 : i32
    %37 = tpu.dynamic_rotate %0 by %c239_i32 dim 1 : vector<8x256xf32>, i32 -> vector<8x256xf32>
    %c8_18 = arith.constant 8 : index
    %c0_19 = arith.constant 0 : index
    %38 = vector.load %arg4[%c8_18, %c0_19] : memref<9x256xf32, #tpu.memory_space<vmem>>, vector<1x256xf32>
    %39 = vector.broadcast %38 : vector<1x256xf32> to vector<8x256xf32>
    %40 = arith.mulf %37, %39 : vector<8x256xf32>
    %c64 = arith.constant 64 : index
    %c0_20 = arith.constant 0 : index
    %41 = vector.load %arg6[%c64, %c0_20] : memref<72x256xf32, #tpu.memory_space<vmem>>, vector<8x256xf32>
    tpu.vector_store %arg6[%c64, %c0_20], %40 {strides = array<i32>} : memref<72x256xf32, #tpu.memory_space<vmem>>, vector<8x256xf32>,
    %c0_21 = arith.constant 0 : index
    %c0_22 = arith.constant 0 : index
    %42 = vector.load %arg2[%c0_21, %c0_22] : memref<8x72xf32, #tpu.memory_space<vmem>>, vector<8x72xf32>
    %c0_23 = arith.constant 0 : index
    %c0_24 = arith.constant 0 : index
    %43 = vector.load %arg6[%c0_23, %c0_24] : memref<72x256xf32, #tpu.memory_space<vmem>>, vector<72x256xf32>
    %cst = arith.constant dense<0.000000e+00> : vector<8x256xf32>
    %44 = tpu.matmul %42, %43, %cst {dimension_numbers = #tpu.dot_dimension_numbers<[1], [0], [0], [1], [0, 0, 1, 1], [], []>} : vector<8x72xf32>, vector<72x256xf32>, vector<8x256xf32> -> vector<8x256xf32>
    %c0_25 = arith.constant 0 : index
    %c0_26 = arith.constant 0 : index
    %45 = vector.load %arg3[%c0_25, %c0_26] : memref<8x1xf32, #tpu.memory_space<vmem>>, vector<8x1xf32>
    %46 = vector.broadcast %45 : vector<8x1xf32> to vector<8x256xf32>
    %47 = arith.addf %44, %46 : vector<8x256xf32>
    %cst_27 = arith.constant 0.000000e+00 : f32
    %48 = vector.broadcast %cst_27 : f32 to vector<8x256xf32>
    %49 = arith.maximumf %47, %48 : vector<8x256xf32>
    %c0_28 = arith.constant 0 : index
    %c0_29 = arith.constant 0 : index
    %50 = vector.load %arg5[%c0_28, %c0_29] : memref<8x256xf32, #tpu.memory_space<vmem>>, vector<8x256xf32>
    tpu.vector_store %arg5[%c0_28, %c0_29], %49 {strides = array<i32>} : memref<8x256xf32, #tpu.memory_space<vmem>>, vector<8x256xf32>,
    return
  }
  func.func @transform_0(%arg0: i32) -> (i32, i32) {
    %c0_i32 = arith.constant 0 : i32
    %c0_i32_0 = arith.constant 0 : i32
    return %c0_i32, %arg0 : i32, i32
  }
  func.func @transform_1(%arg0: i32) -> (i32, i32) {
    %c0_i32 = arith.constant 0 : i32
    %c0_i32_0 = arith.constant 0 : i32
    %c0_i32_1 = arith.constant 0 : i32
    return %c0_i32, %c0_i32_0 : i32, i32
  }
  func.func @transform_2(%arg0: i32) -> (i32, i32) {
    %c0_i32 = arith.constant 0 : i32
    %c0_i32_0 = arith.constant 0 : i32
    %c0_i32_1 = arith.constant 0 : i32
    return %c0_i32, %c0_i32_0 : i32, i32
  }
  func.func @transform_3(%arg0: i32) -> (i32, i32) {
    %c0_i32 = arith.constant 0 : i32
    %c0_i32_0 = arith.constant 0 : i32
    %c0_i32_1 = arith.constant 0 : i32
    return %c0_i32, %c0_i32_0 : i32, i32
  }
  func.func @transform_4(%arg0: i32) -> (i32, i32) {
    %c0_i32 = arith.constant 0 : i32
    %c0_i32_0 = arith.constant 0 : i32
    return %c0_i32, %arg0 : i32, i32
  }
}

</mosaic_0001>

<bundles_post_ra>
// kernel: tpu_custom_call.1
= control target key start
LH: loop header
LB: loop body
LE: loop exit
PB: predicated region body
PF: predicated region fallthrough
CT: control target
= control target key end

     0   :  { %9 = vsyncpa [#allocation4], 0  ;;  %s995_s0 = inlined_call_operand.hbm [shape: f32[8,512], index: 0, kind: input, shape index: {}]   ;;  %s996_s1 = inlined_call_operand.vmem [shape: f32[8,72], index: 1, kind: input, shape index: {}]   ;;  %s997_s2 = inlined_call_operand.vmem [shape: f32[8,1], index: 2, kind: input, shape index: {}]   ;;  %s998_s3 = inlined_call_operand.hbm [shape: f32[9,256], index: 3, kind: input, shape index: {}]   ;;  %s999_s4 = inlined_call_operand.hbm [shape: f32[8,512], index: 4, kind: output, shape index: {}]  }
   0x1   :  { %11 = vsyncpa [#allocation4 + $0x1], 0 }
   0x2   :  { %12 = vsyncpa [#allocation7], 0 }
   0x3   :  { %13 = vsyncpa [#allocation5], 0 }
   0x4   :  { %15 = vsyncpa [#allocation5 + $0x1], 0  ;;  %s813_s15 = smov 0   ;;  %s815_s16 = smov 0  }
   0x5   :  { %s817_s17 = smov 0   ;;  %s819_s18 = smov 0  }
   0x6 LB: > { %s158_s21 = sshll.u32 %s998_s3, 4  ;;  %s837_s22 = sadd.s32 4294967295, %s774_s18   ;;  %s774_s18 = sphi %s819_s18, %s1009_s18   ;;  %s770_s17 = sphi %s817_s17, %s1008_s17   ;;  %s766_s16 = sphi %s815_s16, %s1007_s16   ;;  %s762_s15 = sphi %s813_s15, %s1006_s15   ;;  %s159_s21 = int_to_ptr.hbm [resolvable:$true] %s158_s21 }
   0x7   : > { %p555_p0 = scmp.ge.s32.totalorder %s774_s18, 1  ;;  %p42_p1 = scmp.eq.s32.totalorder %s837_s22, 0 }
   0x8   : > { %p141_p2 = scmp.lt.s32.totalorder %s774_s18, 3  ;;  %s776_s24 = smov [#allocation6]  }
   0x9   : > { %s160_s25 = sshll.u32 %s776_s24, 4  ;;  %s777_s26 = smov 256   ;;  %s161_s25 = int_to_ptr.vmem [resolvable:$true] %s160_s25 }
   0xa   : > { %p842_p3 = pnand %p555_p0, %p141_p2  ;;  %s778_s27 = smov 16  }
   0xb   : > { %s554_s28 = sadd.s32 4294967294, %s774_s18   ;;  %s853_s29 = sadd.s32 1, %s774_s18  }
   0xc   : > { %p582_p4 = pneg %p842_p3  ;;  %s28_s30 = sadd.s32 1, %s770_s17 }
   0xd   : > { %s25_s5 = ssub.s32 %s774_s18, %s853_s29  ;;  %p35_p7 = scmp.ne.s32.totalorder %s770_s17, %s766_s16 }
   0xe   : > { %p583_p6 = pnand %p582_p4, %p42_p1  ;;  %p26_p8 = scmp.eq.s32.totalorder %s25_s5, 0 }
   0xf   : > { %p36_p9 = scmp.eq.s32.totalorder %s774_s18, 0  ;;  %p41_p10 = scmp.ne.s32.totalorder %s766_s16, %s762_s15 }
  0x10   : > { %585 = dma.hbm_to_vmem [thread:$0]  (!%p583_p6), %s159_s21, 512, %s161_s25, [#allocation7], %s777_s26, %s777_s26, %s778_s27  }
  0x11   : > { %p128_p11 = scmp.eq.s32.totalorder %s837_s22, 1  ;;  %p869_p12 = por %p42_p1, %p41_p10 }
  0x12   : > { %s865_s6 = scalar_select %p26_p8, %s770_s17, %s28_s30  }
  0x13   : > { %p873_p13 = por %p128_p11, %p35_p7  ;;  %p134_p0 = scmp.eq.s32.totalorder %s554_s28, 1 }
  0x14   : > { %p37_p2 = por %p36_p9, %p35_p7  ;;  %s174_s9 = sand.u32 1, %s770_s17  }
  0x15   : > { %p878_p4 = por %p134_p0, %p41_p10  ;;  %p595_p6 = scmp.lt.s32.totalorder %s774_s18, 2 }
  0x16   : > { %s558_s11 = sshll.u32 %s174_s9, 4  ;;  %s572_s12 = sshll.u32 %s774_s18, 4 }
  0x17   : > { %s183_s19 = scalar_lea.hbm %s995_s0, %s572_s12  ;;  %s178_s21 = scalar_lea.vmem [#allocation3], %s558_s11 }
  0x18   : > { %s185_s20 = sshll.u32 %s183_s19, 4  ;;  %s187_s24 = sshll.u32 %s178_s21, 4  ;;  %s186_s20 = int_to_ptr.hbm [resolvable:$true] %s185_s20  ;;  %s188_s24 = int_to_ptr.vmem [resolvable:$true] %s187_s24 }
  0x19   : > { %p887_p8 = pnand %p595_p6, %p37_p2  ;;  %s175_s26 = scalar_lea.sflag [#allocation4], %s174_s9 }
  0x1a   : > { %s674_s27 = sshra.s32 %s186_s20, 4  ;;  %s681_s11 = scalar_lea.hbm %s995_s0, 32  ;;  %s675_s27 = int_to_ptr.hbm [resolvable:$true] %s674_s27 }
  0x1b   : > { %s676_s28 = scalar_lea.hbm %s675_s27, 16  ;;  %p678_p9 = pneg %p887_p8 }
  0x1c   : > { %p677_p7 = scmp.ne.s32.totalorder %s675_s27, %s676_s28  ;;  %p682_p0 = scmp.lt.s32.totalorder %s675_s27, %s995_s0 }
  0x1d   : > { %p683_p2 = scmp.lt.s32.totalorder %s681_s11, %s676_s28 }
  0x1e   : > { %p679_p10 = pnand %p678_p9, %p677_p7 }
  0x1f   : > { %p684_p6 = por %p683_p2, %p682_p0 }
  0x20   : > { %p680_p11 = pneg %p679_p10 }
  0x22   : > { %p685_p5 = pnand %p684_p6, %p680_p11 }
  0x24   : > { %688 = shalt.err (!%p685_p5)
}
  0x25   : > { %589 = dma.hbm_to_vmem [thread:$0]  (!%p887_p8), %s186_s20, 256, %s188_s24, %s175_s26  }
  0x26   : > { %196 = sbr.rel (%p842_p3) target bundleno = 340 (0x154), region = 36  ;;  %s904_s9 = sand.u32 (!%p842_p3), 1, %s766_s16  }
  0x27   : > { %s562_s14 = sshll.u32 (!%p842_p3), %s904_s9, 4  ;;  %s199_s19 = scalar_lea.sflag (!%p842_p3), [#allocation4], %s904_s9 }
  0x28   : > { %s202_s21 = scalar_lea.vmem (!%p842_p3), [#allocation3], %s562_s14 }
  0x2b   : > { %749 = dma.done.wait (%p869_p12), %s199_s19, 256  }
  0x2c   : > { %751 = vsyncadd (%p869_p12), %s199_s19, 4294967040 }
  0x2d   : > { %753 = dma.done.wait (%p42_p1), [#allocation7], 512  }
  0x2e   : > { %755 = vsyncadd (%p42_p1), [#allocation7], 4294966784  ;;  %v918_v0 = vld [vmem:[%s202_s21] sm:$0xff]  ;;  %s779_s23 = smov 112   ;;  %s780_s20 = smov 111   ;;  %v923_v1 = vld [vmem:[%s202_s21 + $0x8] sm:$0xff]  ;;  %v241_v3 = vlaneseq }
  0x2f   : > { %348 = vrot.lane.b32.xlu1 %v918_v0, %s779_s23  ;;  %366 = vrot.lane.b32.xlu0 %v918_v0, %s780_s20  ;;  %s781_s24 = smov 113   ;;  %s782_s7 = smov 127   ;;  %v374_v7 = vld [vmem:[#allocation6 + $0x10] ss:$8 sm:$0x3]  ;;  %v403_v35 = vld [vmem:[%s997_s2] sm:$0xff] }
  0x30   : > { %330 = vrot.lane.b32.xlu2 %v918_v0, %s781_s24  ;;  %s783_s25 = smov 1   ;;  %s784_s26 = smov 15   ;;  %v938_v6 = vand.u32 127, %v241_v3  ;;  %v356_v9 = vld [vmem:[#allocation6 + $0x7] ss:$8 sm:$0x3] }
  0x31   : > { %s785_s27 = smov 16   ;;  %s786_s28 = smov 17   ;;  %v376_v10 = vperm.slane %v374_v7, 0  ;;  %v377_v11 = vperm.slane %v374_v7, 1  ;;  %v358_v15 = vperm.slane %v356_v9, 0  ;;  %v359_v16 = vperm.slane %v356_v9, 1 }
  0x32   : > { %vm352_vm0 = vcmp.lt.s32.totalorder %v938_v6, 112  ;;  %vm370_vm1 = vcmp.lt.s32.totalorder %v938_v6, 111  ;;  %v338_v12 = vld [vmem:[#allocation6 + $0x6] ss:$8 sm:$0x3]  ;;  %vm334_vm2 = vcmp.lt.s32.totalorder %v938_v6, 113 }
  0x33   : > { %v340_v23 = vperm.slane %v338_v12, 0  ;;  %v341_v24 = vperm.slane %v338_v12, 1  ;;  %v320_v27 = vld [vmem:[#allocation6 + $0x5] ss:$8 sm:$0x3]  ;;  %vm316_vm3 = vcmp.lt.s32.totalorder %v938_v6, 127 }
  0x34   : > { %v322_v33 = vperm.slane %v320_v27, 0  ;;  %v323_v34 = vperm.slane %v320_v27, 1  ;;  %v787_v36 = vmov 0   ;;  %v300_v43 = vld [vmem:[#allocation6 + $0x3] ss:$8 sm:$0x3] }
  0x35   : > { %642 = vset.pattern.permute.xlu1 %v787_v36  ;;  %643 = vset.pattern.permute.xlu0 %v787_v36  ;;  %v282_v44 = vld [vmem:[#allocation6 + $0x2] ss:$8 sm:$0x3]  ;;  %vm296_vm4 = vcmp.lt.s32.totalorder %v938_v6, 1  ;;  %v302_v45 = vperm.slane %v300_v43, 0  ;;  %v303_v46 = vperm.slane %v300_v43, 1 }
  0x36   : > { %vm278_vm5 = vcmp.lt.s32.totalorder %v938_v6, 15  ;;  %v284_v48 = vperm.slane %v282_v44, 0  ;;  %v285_v49 = vperm.slane %v282_v44, 1  ;;  %v264_v60 = vld [vmem:[#allocation6 + $0x1] ss:$8 sm:$0x3] }
  0x37   : > { %350 = vrot.lane.b32.xlu1 %v923_v1, %s779_s23  ;;  %368 = vrot.lane.b32.xlu0 %v923_v1, %s780_s20  ;;  %vm260_vm6 = vcmp.lt.s32.totalorder %v938_v6, 16  ;;  %v266_v61 = vperm.slane %v264_v60, 0  ;;  %v267_v62 = vperm.slane %v264_v60, 1  ;;  %vm243_vm7 = vcmp.lt.s32.totalorder %v938_v6, 17  ;;  %s573_s13 = sshll.u32 %s837_s22, 4  ;;  %s232_s20 = scalar_lea.vmem [#allocation8], %s562_s14 }
  0x38   : > { %332 = vrot.lane.b32.xlu2 %v923_v1, %s781_s24  ;;  %vm409_vm8 = vcmask 588800   ;;  %s469_s23 = scalar_lea.hbm %s999_s4, %s573_s13  ;;  %s471_s24 = sshll.u32 %s232_s20, 4  ;;  %s472_s24 = int_to_ptr.vmem [resolvable:$true] %s471_s24 }
  0x39   : > { %s458_s22 = scalar_lea.sflag [#allocation5], %s904_s9  ;;  %s724_s14 = scalar_lea.hbm %s999_s4, 32 }
  0x3f   : > { %314 = vrot.lane.b32.xlu1 %v923_v1, %s782_s7  ;;  %312 = vrot.lane.b32.xlu0 %v918_v0, %s782_s7  ;;  %s473_s7 = sshll.u32 %s469_s23, 4  ;;  %s474_s7 = int_to_ptr.hbm [resolvable:$true] %s473_s7 }
  0x40   : > { %292 = vrot.lane.b32.xlu2 %v918_v0, %s783_s25 }
  0x47   : > { %274 = vrot.lane.b32.xlu1 %v918_v0, %s784_s26  ;;  %294 = vrot.lane.b32.xlu0 %v923_v1, %s783_s25  ;;  %s718_s25 = sshra.s32 %s474_s7, 4  ;;  %s719_s25 = int_to_ptr.hbm [resolvable:$true] %s718_s25 }
  0x48   : > { %276 = vrot.lane.b32.xlu2 %v923_v1, %s784_s26  ;;  %s720_s26 = scalar_lea.hbm %s719_s25, 16  ;;  %p725_p12 = scmp.lt.s32.totalorder %s719_s25, %s999_s4 }
  0x49   : > { %p721_p1 = scmp.ne.s32.totalorder %s719_s25, %s720_s26  ;;  %p726_p8 = scmp.lt.s32.totalorder %s724_s14, %s720_s26 }
  0x4b   : > { %p722_p3 = pnand %p721_p1, %p873_p13  ;;  %p727_p7 = por %p726_p8, %p725_p12 }
  0x4d   : > { %p723_p5 = pneg %p722_p3 }
  0x4f   : > { %258 = vrot.lane.b32.xlu1 %v923_v1, %s785_s27  ;;  %256 = vrot.lane.b32.xlu0 %v918_v0, %s785_s27  ;;  %p728_p9 = pnand %p727_p7, %p723_p5 }
  0x50   : > { %237 = vrot.lane.b32.xlu2 %v918_v0, %s786_s28 }
  0x57   : > { %239 = vrot.lane.b32.xlu0 %v923_v1, %s786_s28  ;;  %406 = vperm.xlu1 %642, %v403_v35  }
  0x8a   : > { %v331_v2 = vpop.permute.xlu2 %330 }
  0x92   : > { %v333_v8 = vpop.permute.xlu2 %332 }
  0x93   : > { %v335_v25 = vsel %vm334_vm2, %v331_v2, %v333_v8  ;;  %v336_v26 = vsel %vm334_vm2, %v333_v8, %v331_v2 }
  0x94   : > { %v344_v31 = vmul.f32 %v340_v23, %v335_v25  ;;  %v345_v32 = vmul.f32 %v341_v24, %v336_v26 }
  0x9a   : > { %v293_v30 = vpop.permute.xlu2 %292 }
  0xa1   : > { %v349_v4 = vpop.permute.xlu1 %348  ;;  %v367_v5 = vpop.permute.xlu0 %366 }
  0xa2   : > { %v277_v47 = vpop.permute.xlu2 %276 }
  0xa9   : > { %v351_v13 = vpop.permute.xlu1 %350  ;;  %v369_v14 = vpop.permute.xlu0 %368 }
  0xaa   : > { %v353_v17 = vsel %vm352_vm0, %v349_v4, %v351_v13  ;;  %v354_v18 = vsel %vm352_vm0, %v351_v13, %v349_v4  ;;  %v371_v19 = vsel %vm370_vm1, %v367_v5, %v369_v14  ;;  %v372_v20 = vsel %vm370_vm1, %v369_v14, %v367_v5  ;;  %v246_v5 = vld [vmem:[#allocation6] ss:$8 sm:$0x3]  ;;  %v238_v7 = vpop.permute.xlu2 %237 }
  0xab   : > { %v380_v21 = vmul.f32 %v376_v10, %v371_v19  ;;  %v381_v22 = vmul.f32 %v377_v11, %v372_v20  ;;  %v362_v28 = vmul.f32 %v358_v15, %v353_v17  ;;  %v363_v29 = vmul.f32 %v359_v16, %v354_v18  ;;  %v384_v15 = vld [vmem:[%s996_s1] sm:$0xff] }
  0xac   : > { %v248_v8 = vperm.slane %v246_v5, 0  ;;  %v249_v9 = vperm.slane %v246_v5, 1 }
  0xad   : > { %420 = vmatpush.msra.mxu0 %v380_v21  ;;  %440 = vmatpush.msra.mxu1 %v381_v22 }
  0xaf   : > { %421 = vmatpush.msra.mxu0 %v362_v28  ;;  %441 = vmatpush.msra.mxu1 %v363_v29 }
  0xb1   : > { %v315_v37 = vpop.permute.xlu1 %314  ;;  %422 = vmatpush.msra.mxu0 %v344_v31  ;;  %442 = vmatpush.msra.mxu1 %v345_v32  ;;  %v313_v38 = vpop.permute.xlu0 %312 }
  0xb2   : > { %v317_v39 = vsel %vm316_vm3, %v313_v38, %v315_v37  ;;  %v318_v40 = vsel %vm316_vm3, %v315_v37, %v313_v38 }
  0xb3   : > { %v326_v41 = vmul.f32 %v322_v33, %v317_v39  ;;  %v327_v42 = vmul.f32 %v323_v34, %v318_v40 }
  0xb5   : > { %423 = vmatpush.msra.mxu0 %v326_v41  ;;  %443 = vmatpush.msra.mxu1 %v327_v42 }
  0xb7   : > { %424 = vmatpush.msra.mxu0 %v918_v0  ;;  %444 = vmatpush.msra.mxu1 %v923_v1 }
  0xb9   : > { %v275_v50 = vpop.permute.xlu1 %274  ;;  %v295_v51 = vpop.permute.xlu0 %294 }
  0xba   : > { %v297_v52 = vsel %vm296_vm4, %v293_v30, %v295_v51  ;;  %v298_v53 = vsel %vm296_vm4, %v295_v51, %v293_v30  ;;  %v279_v54 = vsel %vm278_vm5, %v275_v50, %v277_v47  ;;  %v280_v55 = vsel %vm278_vm5, %v277_v47, %v275_v50 }
  0xbb   : > { %v306_v56 = vmul.f32 %v302_v45, %v298_v53  ;;  %v307_v57 = vmul.f32 %v303_v46, %v297_v52  ;;  %v288_v58 = vmul.f32 %v284_v48, %v280_v55  ;;  %v289_v59 = vmul.f32 %v285_v49, %v279_v54 }
  0xbd   : > { %425 = vmatpush.msra.mxu0 %v306_v56  ;;  %445 = vmatpush.msra.mxu1 %v307_v57 }
  0xbf   : > { %426 = vmatpush.msra.mxu0 %v288_v58  ;;  %446 = vmatpush.msra.mxu1 %v289_v59 }
  0xc1   : > { %v259_v63 = vpop.permute.xlu1 %258  ;;  %v257_v0 = vpop.permute.xlu0 %256 }
  0xc2   : > { %v261_v1 = vsel %vm260_vm6, %v257_v0, %v259_v63  ;;  %v262_v2 = vsel %vm260_vm6, %v259_v63, %v257_v0 }
  0xc3   : > { %v270_v3 = vmul.f32 %v266_v61, %v262_v2  ;;  %v271_v4 = vmul.f32 %v267_v62, %v261_v1 }
  0xc5   : > { %427 = vmatpush.msra.mxu0 %v270_v3  ;;  %447 = vmatpush.msra.mxu1 %v271_v4 }
  0xc9   : > { %v240_v10 = vpop.permute.xlu0 %239  ;;  %v407_v6 = vpop.permute.xlu1 %406 }
  0xca   : > { %v244_v11 = vsel %vm243_vm7, %v238_v7, %v240_v10  ;;  %v245_v12 = vsel %vm243_vm7, %v240_v10, %v238_v7 }
  0xcb   : > { %v252_v13 = vmul.f32 %v248_v8, %v245_v12  ;;  %v253_v14 = vmul.f32 %v249_v9, %v244_v11 }
  0xcd   : > { %428 = vmatpush.msra.mxu0 %v252_v13  ;;  %448 = vmatpush.msra.mxu1 %v253_v14 }
  0xce   : > { %565 = vmatmul.msk.f32.vlgmr.msra.gmra.mxu0 %vm409_vm8, %v384_v15  ;;  %566 = vmatmul.msk.f32.vlgmr.msra.gmra.mxu1 %vm409_vm8, %v384_v15 }
 0x14b   : > { %v430_v16 = vpop.f32.mrf.mxu0  ;;  %v450_v17 = vpop.f32.mrf.mxu1 }
 0x14c   : > { %v431_v18 = vadd.f32 %v430_v16, %v407_v6  ;;  %v451_v19 = vadd.f32 %v450_v17, %v407_v6 }
 0x14e   : > { %v453_v20 = vmax.f32 %v431_v18, 0.0  ;;  %v454_v21 = vmax.f32 %v451_v19, 0.0 }
 0x150   : > { %455 = vst [vmem:[%s232_s20] sm:$0xff] %v453_v20 }
 0x151   : > { %456 = vst [vmem:[%s232_s20 + $0x8] sm:$0xff] %v454_v21 }
 0x152   : > { %731 = shalt.err (!%p728_p9)
}
 0x153   : > { %580 = dma.vmem_to_hbm [thread:$0]  (%p873_p13), %s472_s24, 256, %s474_s7, %s458_s22  }
 0x154 PF: > { %s485_s9 = sand.u32 1, %s762_s15   ;;  %p1005_p10 = scmp.ge.s32.totalorder %s774_s18, 2 }
 0x155   : > { %s486_s11 = scalar_lea.sflag [#allocation5], %s485_s9 }
 0x156   : > { %p591_p11 = pnand %p1005_p10, %p878_p4 }
 0x158   : > { %p592_p0 = pneg %p591_p11 }
 0x15a   : > { %757 = dma.done.wait (%p592_p0), %s486_s11, 256  }
 0x15b   : > { %759 = vsyncadd (%p592_p0), %s486_s11, 4294967040  ;;  %p18_p2 = scmp.ge.s32.totalorder %s853_s29, 4   ;;  %s1006_s15 = smov %s766_s16 }
 0x15c   : > { %s1007_s16 = smov %s770_s17  ;;  %s1008_s17 = smov %s865_s6 }
 0x15d   : > { %s1009_s18 = smov %s853_s29  ;;  %20 = sbr.rel (!%p18_p2) target bundleno = 6 (0x6), region = 92 }
 0x162   :  { %492 = vsyncpa [#allocation4], 1 }
 0x163   :  { %494 = vsyncpa [#allocation4 + $0x1], 1 }
 0x164   :  { %495 = vsyncpa [#allocation7], 1 }
 0x165   :  { %496 = vsyncpa [#allocation5], 1 }
 0x166   :  { %498 = vsyncpa [#allocation5 + $0x1], 1 }

</bundles_post_ra>
